<compile_context>
chip_gen: v5e
topology: v5e:2x2
jax: 0.10.0
libtpu: 0.0.40
codegen_flags: <defaults>
</compile_context>

<pallas_src>
import functools
import inspect

import jax
import jax.numpy as jnp
from jax.experimental import pallas as pl
from jax.experimental.pallas import tpu as pltpu

_LANE = 128
_SUBLANE = 8


# --------------------------------------------------------------------------- #
# Kernels
# --------------------------------------------------------------------------- #
def _normalize_and_store(pooled, o_ref):
    """pooled: (t_n, C) f32 spatial means -> o_ref = 20 * L2-normalize(pooled)."""
    sq = jnp.sum(pooled * pooled, axis=-1, keepdims=True)              # (t_n, 1)
    # F.normalize: x / max(||x||, 1e-12) == x * rsqrt(max(||x||^2, 1e-24)).
    # Fold the 20x scale into the (t_n, 1) vector before the broadcast multiply.
    inv_norm = 20.0 * jax.lax.rsqrt(jnp.maximum(sq, 1e-24))
    o_ref[...] = (pooled * inv_norm).astype(o_ref.dtype)


def _rajeev_kernel_single(x_ref, o_ref, *, inv_hw):
    """Whole H*W fits in one chunk: grid = (N blocks,)."""
    pooled = jnp.sum(x_ref[...], axis=-1, dtype=jnp.float32) * inv_hw  # (t_n, C)
    _normalize_and_store(pooled, o_ref)


def _rajeev_kernel_multi(x_ref, o_ref, acc_ref, *, inv_hw, hw, t_hw):
    """Streaming spatial reduction: grid = (N blocks, HW chunks)."""
    k = pl.program_id(1)
    last = pl.num_programs(1) - 1
    n_sub = t_hw // _LANE          # t_hw is a multiple of 128 on this path
    tail = hw % t_hw               # python int; 0 -> every chunk fully valid

    @pl.when(k == 0)
    def _init():
        acc_ref[...] = jnp.zeros_like(acc_ref)

    def _accumulate(x):
        # Lane-aligned 128-wide slices: pure full-vreg VALU adds (no XLU reduce in the
        # hot loop); one read-modify-write of acc_ref per grid step.
        partial = x[:, :, 0:_LANE].astype(jnp.float32)
        for j in range(1, n_sub):
            partial = partial + x[:, :, j * _LANE:(j + 1) * _LANE].astype(jnp.float32)
        acc_ref[...] += partial

    if tail == 0:
        _accumulate(x_ref[...])
    else:
        @pl.when(k != last)
        def _full_chunk():
            _accumulate(x_ref[...])

        @pl.when(k == last)
        def _ragged_chunk():
            # Last chunk extends past hw with unspecified data: zero those lanes.
            lane = jax.lax.broadcasted_iota(jnp.int32, x_ref.shape, dimension=2)
            _accumulate(jnp.where(lane < tail, x_ref[...].astype(jnp.float32), 0.0))

    @pl.when(k == last)
    def _finalize():
        pooled = jnp.sum(acc_ref[...], axis=-1) * inv_hw   # single XLU reduce per N-block
        _normalize_and_store(pooled, o_ref)


# --------------------------------------------------------------------------- #
# Tiling / wrapper
# --------------------------------------------------------------------------- #
def _round_down(x, m):
    return max(m, (x // m) * m)


def _supports_pipeline_mode():
    try:
        return (hasattr(pl, "Buffered")
                and "pipeline_mode" in inspect.signature(pl.BlockSpec).parameters)
    except (TypeError, ValueError):
        return False


def _select_tiles(N, C, hw, itemsize, *, vmem_budget, target_block_bytes):
    """Pick (t_n, grid_n, t_hw, num_hw)."""
    # dtype-aware lane-chunk target: ~4 KiB per (n, c) row (f32 -> 1024, bf16 -> 2048).
    lanes_target = max(_LANE, 4096 // itemsize)

    # ---- batch tile ("parallel" grid axis) ---------------------------------------
    if N <= _SUBLANE:
        t_n = N          # full dim: (t_n, C) output block stays layout-legal
    else:
        # >= 2 N-blocks so both v7x TensorCores get work; t_n a multiple of 8; and
        # roughly target_block_bytes per input block when the per-row footprint is tiny.
        half = _round_down(max(_SUBLANE, -(-N // 2)), _SUBLANE)
        row_bytes = C * min(hw, lanes_target) * itemsize
        want = _round_down(max(_SUBLANE, target_block_bytes // max(1, row_bytes)), _SUBLANE)
        t_n = min(half, want)
    grid_n = -(-N // t_n)

    # ---- spatial chunk ("arbitrary" reduction axis, last) ------------------------
    # VMEM: double-buffered input block + (t_n, C, 128) f32 accumulator + output.
    fixed = t_n * C * _LANE * 4 + 2 * t_n * C * itemsize
    per_lane = 2 * t_n * C * itemsize
    lanes_budget = _round_down(max(_LANE, (vmem_budget - fixed) // max(1, per_lane)), _LANE)
    t_hw_cap = min(lanes_target, lanes_budget)

    if hw <= t_hw_cap:
        t_hw, num_hw = hw, 1       # full-dim block: no tail mask, no lane accumulator
    else:
        # Prefer a multiple of 128 that divides hw exactly (no ragged-tail mask needed).
        t_hw = next((m * _LANE for m in range(t_hw_cap // _LANE, 0, -1)
                     if hw % (m * _LANE) == 0), t_hw_cap)
        num_hw = -(-hw // t_hw)
    return t_n, grid_n, t_hw, num_hw


def rajeev_net(x, *, vmem_budget_bytes=24 * 1024 * 1024, target_block_bytes=2 * 1024 * 1024):
    """x: (N, C, H, W) array (NCHW, like PyTorch). Returns (N, C) = 20 * normalize(GAP(x))."""
    N, C, H, W = x.shape
    hw = H * W
    itemsize = jnp.dtype(x.dtype).itemsize
    x_flat = x.reshape(N, C, hw)   # free metadata reshape; no pre-kernel pad/copy

    t_n, grid_n, t_hw, num_hw = _select_tiles(
        N, C, hw, itemsize,
        vmem_budget=vmem_budget_bytes, target_block_bytes=target_block_bytes)
    inv_hw = 1.0 / float(hw)

    # vmem_limit: actual requirement + headroom, capped well under v7x's 64 MiB physical.
    vmem_needed = 2 * t_n * C * t_hw * itemsize + 2 * t_n * C * itemsize
    if num_hw > 1:
        vmem_needed += t_n * C * _LANE * 4
    vmem_limit = int(min(40 * 1024 * 1024, max(16 * 1024 * 1024, 2 * vmem_needed)))

    cost = pl.CostEstimate(
        flops=N * C * hw + 4 * N * C,
        transcendentals=N,
        bytes_accessed=N * C * hw * itemsize + N * C * itemsize,
    )
    out_shape = jax.ShapeDtypeStruct((N, C), x.dtype)

    if num_hw == 1:
        kernel = functools.partial(_rajeev_kernel_single, inv_hw=inv_hw)
        grid_spec = pltpu.PrefetchScalarGridSpec(
            num_scalar_prefetch=0,
            grid=(grid_n,),
            in_specs=[pl.BlockSpec((t_n, C, t_hw), lambda i: (i, 0, 0))],
            out_specs=pl.BlockSpec((t_n, C), lambda i: (i, 0)),
        )
        dim_sem = ("parallel",)
    else:
        kernel = functools.partial(_rajeev_kernel_multi, inv_hw=inv_hw, hw=hw, t_hw=t_hw)
        in_spec_kwargs = {}
        # Deeper input pipelining when blocks are small (hides DMA turnaround on v5e's
        # lower HBM bandwidth; negligible VMEM cost so also safe on v7x).
        if (num_hw > 2 and t_n * C * t_hw * itemsize < (512 << 10)
                and _supports_pipeline_mode()):
            in_spec_kwargs["pipeline_mode"] = pl.Buffered(3)
        grid_spec = pltpu.PrefetchScalarGridSpec(
            num_scalar_prefetch=0,
            grid=(grid_n, num_hw),
            in_specs=[pl.BlockSpec((t_n, C, t_hw), lambda i, k: (i, 0, k), **in_spec_kwargs)],
            # Same output block for every k -> output stays VMEM-resident across the
            # reduction axis; C un-tiled so the L2 norm sees the full channel vector.
            out_specs=pl.BlockSpec((t_n, C), lambda i, k: (i, 0)),
            scratch_shapes=[pltpu.VMEM((t_n, C, _LANE), jnp.float32)],
        )
        dim_sem = ("parallel", "arbitrary")

    return pl.pallas_call(
        kernel,
        out_shape=out_shape,
        grid_spec=grid_spec,
        compiler_params=pltpu.CompilerParams(
            dimension_semantics=dim_sem,
            vmem_limit_bytes=vmem_limit,
        ),
        cost_estimate=cost,
    )(x_flat)


# --------------------------------------------------------------------------- #
# Self-test
# --------------------------------------------------------------------------- #
def _reference(x):
    pooled = jnp.mean(x.astype(jnp.float32), axis=(2, 3))
    norm = jnp.maximum(jnp.sqrt(jnp.sum(pooled * pooled, axis=-1, keepdims=True)), 1e-12)
    return (20.0 * pooled / norm).astype(x.dtype)


if __name__ == "__main__":
    key = jax.random.PRNGKey(0)

    test_shapes = [
        (2, 4, 16, 16),    # primary spec shape: single-chunk path
        (2, 4, 35, 35),    # multi-chunk path with a ragged (masked) last chunk
        (16, 8, 12, 12),   # multiple blocks along the "parallel" N axis
    ]
    for shape in test_shapes:
        key, sub = jax.random.split(key)
        x = jax.random.normal(sub, shape, dtype=jnp.float32)
        out = jax.block_until_ready(rajeev_net(x))
        ref = _reference(x)
        assert out.shape == (shape[0], shape[1])
        assert jnp.allclose(out, ref, atol=1e-5, rtol=1e-5), f"mismatch for shape {shape}"

    print("KERNEL_OK")
</pallas_src>

<mosaic_0001>
module attributes {stable_mosaic.version = 11 : i64} {
  func.func @_rajeev_kernel_single(%arg0: i32, %arg1: memref<2x4x256xf32, #tpu.memory_space<vmem>>, %arg2: memref<2x4xf32, #tpu.memory_space<vmem>>) attributes {dimension_semantics = [#tpu.dimension_semantics<parallel>], iteration_bounds = array<i64: 1>, scalar_prefetch = 0 : i64, scratch_operands = 0 : i64, tpu.core_type = #tpu.core_type<tc>, window_params = [{transform_indices = @transform_0, window_bounds = array<i64: 2, 4, 256>}, {transform_indices = @transform_1, window_bounds = array<i64: 2, 4>}]} {
    %c0 = arith.constant 0 : index
    %c0_0 = arith.constant 0 : index
    %c0_1 = arith.constant 0 : index
    %0 = vector.load %arg1[%c0, %c0_0, %c0_1] : memref<2x4x256xf32, #tpu.memory_space<vmem>>, vector<2x4x256xf32>
    %cst = arith.constant dense<0.000000e+00> : vector<2x4xf32>
    %1 = vector.multi_reduction <add>, %0, %cst [2] : vector<2x4x256xf32> to vector<2x4xf32>
    %cst_2 = arith.constant 3.906250e-03 : f32
    %2 = vector.broadcast %cst_2 : f32 to vector<2x4xf32>
    %3 = arith.mulf %1, %2 : vector<2x4xf32>
    %4 = arith.mulf %3, %3 : vector<2x4xf32>
    %cst_3 = arith.constant dense<0.000000e+00> : vector<2xf32>
    %5 = vector.multi_reduction <add>, %4, %cst_3 [1] : vector<2x4xf32> to vector<2xf32>
    %6 = vector.shape_cast %5 : vector<2xf32> to vector<2x1xf32>
    %cst_4 = arith.constant 1.000000e-24 : f32
    %7 = vector.broadcast %cst_4 : f32 to vector<2x1xf32>
    %8 = arith.maximumf %6, %7 : vector<2x1xf32>
    %9 = math.rsqrt %8 : vector<2x1xf32>
    %cst_5 = arith.constant 2.000000e+01 : f32
    %10 = vector.broadcast %cst_5 : f32 to vector<2x1xf32>
    %11 = arith.mulf %10, %9 : vector<2x1xf32>
    %12 = vector.broadcast %11 : vector<2x1xf32> to vector<2x4xf32>
    %13 = arith.mulf %3, %12 : vector<2x4xf32>
    %c0_6 = arith.constant 0 : index
    %c0_7 = arith.constant 0 : index
    %14 = vector.load %arg2[%c0_6, %c0_7] : memref<2x4xf32, #tpu.memory_space<vmem>>, vector<2x4xf32>
    tpu.vector_store %arg2[%c0_6, %c0_7], %13 {strides = array<i32>} : memref<2x4xf32, #tpu.memory_space<vmem>>, vector<2x4xf32>,
    return
  }
  func.func @transform_0(%arg0: i32) -> (i32, i32, i32) {
    %c0_i32 = arith.constant 0 : i32
    %c0_i32_0 = arith.constant 0 : i32
    %c0_i32_1 = arith.constant 0 : i32
    return %arg0, %c0_i32, %c0_i32_0 : i32, i32, i32
  }
  func.func @transform_1(%arg0: i32) -> (i32, i32) {
    %c0_i32 = arith.constant 0 : i32
    %c0_i32_0 = arith.constant 0 : i32
    return %arg0, %c0_i32 : i32, i32
  }
}

</mosaic_0001>

<bundles_post_ra>
// kernel: tpu_custom_call.1
= control target key start
LH: loop header
LB: loop body
LE: loop exit
PB: predicated region body
PF: predicated region fallthrough
CT: control target
= control target key end

     0   :  { %6 = vsyncpa [#allocation3], 0  ;;  %s204_s0 = inlined_call_operand.hbm [shape: f32[2,4,256], index: 0, kind: input, shape index: {}]   ;;  %s205_s1 = inlined_call_operand.hbm [shape: f32[2,4], index: 1, kind: output, shape index: {}]  }
   0x1   :  { %7 = vsyncpa [#allocation4], 0  ;;  %s12_s8 = sshll.u32 %s204_s0, 4  ;;  %s179_s9 = smov [#allocation2]   ;;  %s13_s8 = int_to_ptr.hbm [resolvable:$true] %s12_s8 }
   0x2   :  { %s14_s10 = sshll.u32 %s179_s9, 4  ;;  %s180_s11 = smov 128   ;;  %s15_s10 = int_to_ptr.vmem [resolvable:$true] %s14_s10 }
   0x3   :  { %s181_s12 = smov 8  }
   0x4   :  { %20 = dma.hbm_to_vmem [thread:$0]  %s13_s8, 256, %s15_s10, [#allocation3], %s180_s11, %s180_s11, %s181_s12  }
   0x5   :  { %175 = dma.done.wait [#allocation3], 256  }
   0x6   :  { %176 = vsyncadd [#allocation3], 4294967040  ;;  %v25_v0 = vld [vmem:[#allocation2] sm:$0xff]  ;;  %v26_v1 = vld [vmem:[#allocation2 + $0x8] sm:$0xff]  ;;  %vm40_vm0 = vcmask 1043456   ;;  %v57_v13 = vlaneseq  ;;  %vm61_vm1 = vcmask 1041409  }
   0x7   :  { %29 = vst [vmem:[#allocation1] ss:$2 sm:$0xff] %v25_v0  ;;  %vm64_vm2 = vcmask 25600   ;;  %v182_v24 = vmov 0   ;;  %s183_s0 = smov [#allocation5]   ;;  %s107_s16 = sshll.u32 %s205_s1, 4  ;;  %s108_s16 = int_to_ptr.hbm [resolvable:$true] %s107_s16 }
   0x8   :  { %33 = vst [vmem:[#allocation1 + $0x10] ss:$2 sm:$0xff] %v26_v1  ;;  %v58_v16 = vand.u32 127, %v57_v13  ;;  %123 = vset.pattern.permute.xlu2 %v182_v24  ;;  %122 = vset.pattern.permute.xlu1 %v182_v24  ;;  %s105_s13 = sshll.u32 %s183_s0, 4  ;;  %s106_s13 = int_to_ptr.vmem [resolvable:$true] %s105_s13 }
   0x9   :  { %124 = vset.pattern.permute.xlu0 %v182_v24 }
   0xe   :  { %v30_v2 = vld.sshfl [vmem:[#allocation1] sm:$0xff pattern:$0x75316420]  ;;  %v31_v3 = vld.sshfl [vmem:[#allocation1 + $0x8] sm:$0xff pattern:$0x75316420] }
   0xf   :  { %v41_v4 = vsel %vm40_vm0, %v30_v2, 0.0  ;;  %v42_v5 = vsel %vm40_vm0, %v31_v3, 0.0  ;;  %v34_v7 = vld.sshfl [vmem:[#allocation1 + $0x10] sm:$0xff pattern:$0x75316420] }
  0x10   :  { %v43_v6 = vadd.f32 %v42_v5, %v41_v4  ;;  %v35_v8 = vld.sshfl [vmem:[#allocation1 + $0x18] sm:$0xff pattern:$0x75316420]  ;;  %v46_v9 = vsel %vm40_vm0, %v34_v7, 0.0 }
  0x11   :  { %v47_v10 = vsel %vm40_vm0, %v35_v8, 0.0 }
  0x12   :  { %44 = vadd.xlane.f32.xlu0 %v43_v6  ;;  %v48_v11 = vadd.f32 %v47_v10, %v46_v9 }
  0x1a   :  { %49 = vadd.xlane.f32.xlu0 %v48_v11 }
  0x85   :  { %v45_v12 = vpop.xlane.xlu0 %44 }
  0x86   :  { %v51_v14 = vmul.f32 0.00390625, %v45_v12 }
  0x88   :  { %v53_v17 = vmul.f32 %v51_v14, %v51_v14 }
  0x8a   :  { %v59_v20 = vperm.slane %v53_v17, %v58_v16 }
  0x8d   :  { %v50_v15 = vpop.xlane.xlu0 %49 }
  0x8e   :  { %v52_v18 = vmul.f32 0.00390625, %v50_v15 }
  0x90   :  { %v54_v19 = vmul.f32 %v52_v18, %v52_v18 }
  0x92   :  { %v60_v21 = vperm.slane %v54_v19, %v58_v16 }
  0x94   :  { %v62_v22 = vsel %vm61_vm1, %v60_v21, %v59_v20 }
  0x95   :  { %v65_v23 = vsel %vm64_vm2, %v62_v22, 0.0 }
  0x96   :  { %66 = vadd.xlane.f32.xlu1 %v65_v23 }
 0x109   :  { %v67_v25 = vpop.xlane.xlu1 %66 }
 0x10a   :  { %v68_v26 = vmax.f32 %v67_v25, 1e-24 }
 0x10c   :  { %125 = vrsqrt.f32 %v68_v26  ;;  %vm75_vm4 = vweird.f32 %v68_v26 }
 0x112   :  { %v126_v27 = vpop.eup %125 }
 0x113   :  { %v70_v28 = vmul.f32 %v126_v27, %v68_v26  ;;  %vm76_vm3 = vweird.f32 %v126_v27 }
 0x114   :  { %vm77_vm5 = vmor %vm75_vm4, %vm76_vm3 }
 0x115   :  { %v71_v29 = vmul.f32 %v126_v27, %v70_v28 }
 0x117   :  { %v72_v30 = vmul.f32 0.5, %v71_v29 }
 0x119   :  { %v73_v31 = vsub.f32 1.5, %v72_v30 }
 0x11b   :  { %v74_v32 = vmul.f32 %v126_v27, %v73_v31 }
 0x11d   :  { %v78_v33 = vsel %vm77_vm5, %v126_v27, %v74_v32 }
 0x11e   :  { %v79_v34 = vmul.f32 20.0, %v78_v33 }
 0x120   :  { %v82_v35 = vperm.slane %v79_v34, 1  ;;  %v81_v36 = vperm.slane %v79_v34, 0 }
 0x122   :  { %v86_v37 = vmul.f32 %v82_v35, %v52_v18  ;;  %v85_v38 = vmul.f32 %v81_v36, %v51_v14 }
 0x124   :  { %93 = vperm.xlu2 %123, %v86_v37   ;;  %90 = vperm.xlu1 %122, %v85_v38  }
 0x17e   :  { %v94_v39 = vpop.permute.xlu2 %93 }
 0x17f   :  { %v96_v41 = vperm.slane %v94_v39, %v58_v16 }
 0x196   :  { %v91_v40 = vpop.permute.xlu1 %90 }
 0x197   :  { %v95_v42 = vperm.slane %v91_v40, %v58_v16 }
 0x199   :  { %v97_v43 = vsel %vm61_vm1, %v96_v41, %v95_v42 }
 0x19a   :  { %99 = vst.msk [vmem:[#allocation5] sm:$0x3] %vm64_vm2, %v97_v43 }
 0x19b   :  { %110 = dma.vmem_to_hbm [thread:$0]  %s106_s13, 32, %s108_s16, [#allocation4]  }
 0x19c   :  { %177 = dma.done.wait [#allocation4], 32  }
 0x19d   :  { %178 = vsyncadd [#allocation4], 4294967264 }
 0x19e   :  { %115 = vsyncpa [#allocation3], 1 }
 0x19f   :  { %116 = vsyncpa [#allocation4], 1 }

</bundles_post_ra>
